<compile_context>
chip_gen: v5e
topology: v5e:2x2
jax: 0.10.0
libtpu: 0.0.40
codegen_flags: <defaults>
</compile_context>

<pallas_src>
import jax
import jax.numpy as jnp
from jax import lax
from jax.experimental import pallas as pl
from jax.experimental.pallas import tpu as pltpu

_LANE = 128


def _round_up(a: int, b: int) -> int:
    return -(-a // b) * b


def _make_anyqnn_kernel(n_values: int, inner: int, n_slabs: int, compute_dtype):
    """Kernel body closure over static config.

    Kernel refs:
      x_ref  : (sub, 128) tile of one row's elements (io dtype)
      vs_ref : (n_rows * n_values,)       sorted codebook, flat, SMEM (f32)
      mid_ref: (n_rows * (n_values - 1),) decision midpoints, flat, SMEM (f32)
      o_ref  : (sub, 128) output tile (io dtype)
    """
    n_bounds = n_values - 1
    unrolled = n_bounds <= 64  # small codebooks: fully unroll the boundary scan

    def kernel(x_ref, vs_ref, mid_ref, o_ref):
        r = pl.program_id(0)
        vbase = r * n_values
        mbase = r * n_bounds

        # Hoist the SMEM scalar reads out of the sub-slice loop: read the V
        # codebook values and V-1 midpoints once per grid step.
        if unrolled:
            vs = [vs_ref[vbase + k].astype(compute_dtype) for k in range(n_values)]
            mids = [mid_ref[mbase + k].astype(compute_dtype) for k in range(n_bounds)]

        def quantize_slab(off):
            x = x_ref[pl.ds(off, inner), :].astype(compute_dtype)
            if unrolled:
                # Start at the smallest codebook value; each boundary promotes
                # to the next larger value when x lies above the midpoint.
                best = jnp.full(x.shape, vs[0], dtype=compute_dtype)
                for k in range(n_bounds):
                    best = jnp.where(x > mids[k], vs[k + 1], best)
            else:
                # Large codebooks: bounded vreg pressure, dynamic SMEM reads.
                best = jnp.full(
                    x.shape, vs_ref[vbase].astype(compute_dtype), dtype=compute_dtype
                )

                def bnd(k, b):
                    thr = mid_ref[mbase + k].astype(compute_dtype)
                    val = vs_ref[vbase + 1 + k].astype(compute_dtype)
                    return jnp.where(x > thr, val, b)

                best = lax.fori_loop(0, n_bounds, bnd, best, unroll=4)
            o_ref[pl.ds(off, inner), :] = best.astype(o_ref.dtype)

        if n_slabs == 1:
            quantize_slab(0)
        else:
            # Inner sub-slice loop decouples DMA tile size from live vregs.
            def body(i, carry):
                quantize_slab(pl.multiple_of(i * inner, inner))
                return carry

            lax.fori_loop(0, n_slabs, body, 0)

    return kernel


def anyqnn_forward(
    x: jax.Array,
    values: jax.Array,
    *,
    compute_dtype=None,
    sublane_tile: int = 1024,   # chunks (of 128 lanes) per DMA block
    inner_tile: int = 64,       # chunks per in-register sub-slice
):
    """Pallas AnyQNN forward.

    x      : (n_rows, L)          — float32 or bfloat16
    values : (n_rows, n_values)   — codebook
    returns: (n_rows, L) in x's dtype — nearest codebook value per element.
    """
    n_rows, L = x.shape
    vr, n_values = values.shape
    assert vr == n_rows, "x.shape[0] must equal n_rows of the codebook"

    # I/O dtype: keep bf16 inputs in bf16 at the HBM boundary (halves traffic).
    if x.dtype == jnp.bfloat16:
        io_dtype = jnp.dtype(jnp.bfloat16)
    else:
        io_dtype = jnp.dtype(jnp.float32)
        if x.dtype != jnp.float32:
            x = x.astype(jnp.float32)
    if compute_dtype is None:
        compute_dtype = io_dtype
    compute_dtype = jnp.dtype(compute_dtype)

    if n_values == 1:
        return jnp.broadcast_to(values[:, :1], (n_rows, L)).astype(io_dtype)

    # Sort the per-row codebook and precompute decision thresholds (midpoints)
    # outside the kernel — turns the in-kernel distance scan into cmp+select.
    # Flattened to 1-D so SMEM padding is next_pow2 only (no (8,128) 2-D pad).
    v_sorted = jnp.sort(values.astype(jnp.float32), axis=-1)        # (R, V)
    mids = 0.5 * (v_sorted[:, :-1] + v_sorted[:, 1:])               # (R, V-1)
    v_flat = v_sorted.reshape(-1)                                   # (R*V,)
    mid_flat = mids.reshape(-1)                                     # (R*(V-1),)

    # View each row as (chunks, 128).  `align` keeps sublane blocks legal for
    # the I/O dtype (f32: 8, bf16: 16).
    align = 8 if io_dtype.itemsize == 4 else 16
    n_chunks = -(-L // _LANE)

    inner = min(inner_tile, _round_up(n_chunks, align))
    inner = max(align, _round_up(inner, align))

    sub_cap = max(inner, _round_up(min(sublane_tile, n_chunks), inner))
    g = -(-n_chunks // sub_cap)                      # chunk-axis grid steps
    if n_rows < 2:
        # v7x has 2 TensorCores: keep >= 2 parallel grid steps when possible.
        g = max(g, min(2, -(-n_chunks // inner)))
    sub = _round_up(-(-n_chunks // g), inner)        # balanced block size
    n_slabs = sub // inner
    chunks_p = sub * g
    Lp = chunks_p * _LANE

    # TODO(synk): for ragged L (L % 128 != 0) the pad + final slice are extra
    # full-array HBM passes; a masked in-kernel tail store would remove them.
    # Aligned L (the common case, incl. the demo) takes the zero-copy path.
    xp = x if Lp == L else jnp.pad(x, ((0, 0), (0, Lp - L)))
    x3 = xp.reshape(n_rows, chunks_p, _LANE)

    out3 = pl.pallas_call(
        _make_anyqnn_kernel(n_values, inner, n_slabs, compute_dtype),
        out_shape=jax.ShapeDtypeStruct((n_rows, chunks_p, _LANE), io_dtype),
        grid_spec=pltpu.PrefetchScalarGridSpec(
            num_scalar_prefetch=0,
            grid=(n_rows, g),
            in_specs=[
                # x tile: one row, `sub` chunks of 128 lanes.
                pl.BlockSpec((None, sub, _LANE), lambda r, c: (r, c, 0)),
                # flat sorted codebook + midpoints: whole arrays in SMEM
                # (scalar reads -> cheap scalar->vector splats in the VPU).
                pl.BlockSpec(memory_space=pltpu.MemorySpace.SMEM),
                pl.BlockSpec(memory_space=pltpu.MemorySpace.SMEM),
            ],
            out_specs=pl.BlockSpec((None, sub, _LANE), lambda r, c: (r, c, 0)),
        ),
        compiler_params=pltpu.CompilerParams(
            dimension_semantics=("parallel", "parallel"),
        ),
    )(x3, v_flat, mid_flat)

    out = out3.reshape(n_rows, Lp)
    if Lp != L:
        out = out[:, :L]
    return out


def anyqnn_reference(x, values):
    """Pure-JAX reference mirroring the PyTorch forward."""
    d = (x[:, :, None] - values[:, None, :]) ** 2           # (R, L, V)
    idx = jnp.argmin(d, axis=-1)                            # (R, L), first min
    return jnp.take_along_axis(values, idx, axis=1)         # (R, L)


if __name__ == "__main__":
    n_rows, n_values = 4, 16
    L = 2048  # length along the quantized (last) axis

    key = jax.random.PRNGKey(0)
    k_vals, k_x = jax.random.split(key)

    # Deterministic "parameters" (stand-in for torch.randn in __init__).
    values = jax.random.normal(k_vals, (n_rows, n_values), dtype=jnp.float32)
    x = jax.random.normal(k_x, (n_rows, L), dtype=jnp.float32)

    # --- f32 path: exact match vs the argmin reference ---------------------
    out = jax.block_until_ready(anyqnn_forward(x, values))
    ref = anyqnn_reference(x, values)
    assert out.shape == x.shape and out.dtype == x.dtype
    assert jnp.allclose(out, ref, atol=1e-6), "f32 Pallas output mismatch vs reference"

    # --- bf16 I/O + bf16 compute path (v6e/v7x fast path) -------------------
    # Outputs are bf16-cast codebook values; elements very close to a decision
    # midpoint may flip bins vs f32, so verify per-row codebook membership.
    xb = x.astype(jnp.bfloat16)
    out_b = jax.block_until_ready(anyqnn_forward(xb, values))
    assert out_b.shape == x.shape and out_b.dtype == jnp.bfloat16
    vb = values.astype(jnp.bfloat16)
    member = (out_b[:, :, None] == vb[:, None, :]).any(axis=-1)
    assert bool(member.all()), "bf16 outputs are not codebook values"

    print("KERNEL_OK")
</pallas_src>

<mosaic_0001>
module attributes {stable_mosaic.version = 11 : i64} {
  func.func @kernel(%arg0: i32, %arg1: i32, %arg2: memref<1x16x128xf32, #tpu.memory_space<vmem>>, %arg3: memref<64xf32, #tpu.memory_space<smem>>, %arg4: memref<60xf32, #tpu.memory_space<smem>>, %arg5: memref<1x16x128xf32, #tpu.memory_space<vmem>>) attributes {dimension_semantics = [#tpu.dimension_semantics<parallel>, #tpu.dimension_semantics<parallel>], iteration_bounds = array<i64: 4, 1>, scalar_prefetch = 0 : i64, scratch_operands = 0 : i64, tpu.core_type = #tpu.core_type<tc>, window_params = [{transform_indices = @transform_0, window_bounds = array<i64: 1, 16, 128>}, {transform_indices = @transform_1, window_bounds = array<i64: 64>}, {transform_indices = @transform_2, window_bounds = array<i64: 60>}, {transform_indices = @transform_3, window_bounds = array<i64: 1, 16, 128>}]} {
    %c16_i32 = arith.constant 16 : i32
    %0 = arith.muli %arg0, %c16_i32 : i32
    %c15_i32 = arith.constant 15 : i32
    %1 = arith.muli %arg0, %c15_i32 : i32
    %c0_i32 = arith.constant 0 : i32
    %2 = arith.addi %0, %c0_i32 : i32
    %3 = arith.index_cast %2 : i32 to index
    %4 = memref.load %arg3[%3] : memref<64xf32, #tpu.memory_space<smem>>
    %c1_i32 = arith.constant 1 : i32
    %5 = arith.addi %0, %c1_i32 : i32
    %6 = arith.index_cast %5 : i32 to index
    %7 = memref.load %arg3[%6] : memref<64xf32, #tpu.memory_space<smem>>
    %c2_i32 = arith.constant 2 : i32
    %8 = arith.addi %0, %c2_i32 : i32
    %9 = arith.index_cast %8 : i32 to index
    %10 = memref.load %arg3[%9] : memref<64xf32, #tpu.memory_space<smem>>
    %c3_i32 = arith.constant 3 : i32
    %11 = arith.addi %0, %c3_i32 : i32
    %12 = arith.index_cast %11 : i32 to index
    %13 = memref.load %arg3[%12] : memref<64xf32, #tpu.memory_space<smem>>
    %c4_i32 = arith.constant 4 : i32
    %14 = arith.addi %0, %c4_i32 : i32
    %15 = arith.index_cast %14 : i32 to index
    %16 = memref.load %arg3[%15] : memref<64xf32, #tpu.memory_space<smem>>
    %c5_i32 = arith.constant 5 : i32
    %17 = arith.addi %0, %c5_i32 : i32
    %18 = arith.index_cast %17 : i32 to index
    %19 = memref.load %arg3[%18] : memref<64xf32, #tpu.memory_space<smem>>
    %c6_i32 = arith.constant 6 : i32
    %20 = arith.addi %0, %c6_i32 : i32
    %21 = arith.index_cast %20 : i32 to index
    %22 = memref.load %arg3[%21] : memref<64xf32, #tpu.memory_space<smem>>
    %c7_i32 = arith.constant 7 : i32
    %23 = arith.addi %0, %c7_i32 : i32
    %24 = arith.index_cast %23 : i32 to index
    %25 = memref.load %arg3[%24] : memref<64xf32, #tpu.memory_space<smem>>
    %c8_i32 = arith.constant 8 : i32
    %26 = arith.addi %0, %c8_i32 : i32
    %27 = arith.index_cast %26 : i32 to index
    %28 = memref.load %arg3[%27] : memref<64xf32, #tpu.memory_space<smem>>
    %c9_i32 = arith.constant 9 : i32
    %29 = arith.addi %0, %c9_i32 : i32
    %30 = arith.index_cast %29 : i32 to index
    %31 = memref.load %arg3[%30] : memref<64xf32, #tpu.memory_space<smem>>
    %c10_i32 = arith.constant 10 : i32
    %32 = arith.addi %0, %c10_i32 : i32
    %33 = arith.index_cast %32 : i32 to index
    %34 = memref.load %arg3[%33] : memref<64xf32, #tpu.memory_space<smem>>
    %c11_i32 = arith.constant 11 : i32
    %35 = arith.addi %0, %c11_i32 : i32
    %36 = arith.index_cast %35 : i32 to index
    %37 = memref.load %arg3[%36] : memref<64xf32, #tpu.memory_space<smem>>
    %c12_i32 = arith.constant 12 : i32
    %38 = arith.addi %0, %c12_i32 : i32
    %39 = arith.index_cast %38 : i32 to index
    %40 = memref.load %arg3[%39] : memref<64xf32, #tpu.memory_space<smem>>
    %c13_i32 = arith.constant 13 : i32
    %41 = arith.addi %0, %c13_i32 : i32
    %42 = arith.index_cast %41 : i32 to index
    %43 = memref.load %arg3[%42] : memref<64xf32, #tpu.memory_space<smem>>
    %c14_i32 = arith.constant 14 : i32
    %44 = arith.addi %0, %c14_i32 : i32
    %45 = arith.index_cast %44 : i32 to index
    %46 = memref.load %arg3[%45] : memref<64xf32, #tpu.memory_space<smem>>
    %c15_i32_0 = arith.constant 15 : i32
    %47 = arith.addi %0, %c15_i32_0 : i32
    %48 = arith.index_cast %47 : i32 to index
    %49 = memref.load %arg3[%48] : memref<64xf32, #tpu.memory_space<smem>>
    %c0_i32_1 = arith.constant 0 : i32
    %50 = arith.addi %1, %c0_i32_1 : i32
    %51 = arith.index_cast %50 : i32 to index
    %52 = memref.load %arg4[%51] : memref<60xf32, #tpu.memory_space<smem>>
    %c1_i32_2 = arith.constant 1 : i32
    %53 = arith.addi %1, %c1_i32_2 : i32
    %54 = arith.index_cast %53 : i32 to index
    %55 = memref.load %arg4[%54] : memref<60xf32, #tpu.memory_space<smem>>
    %c2_i32_3 = arith.constant 2 : i32
    %56 = arith.addi %1, %c2_i32_3 : i32
    %57 = arith.index_cast %56 : i32 to index
    %58 = memref.load %arg4[%57] : memref<60xf32, #tpu.memory_space<smem>>
    %c3_i32_4 = arith.constant 3 : i32
    %59 = arith.addi %1, %c3_i32_4 : i32
    %60 = arith.index_cast %59 : i32 to index
    %61 = memref.load %arg4[%60] : memref<60xf32, #tpu.memory_space<smem>>
    %c4_i32_5 = arith.constant 4 : i32
    %62 = arith.addi %1, %c4_i32_5 : i32
    %63 = arith.index_cast %62 : i32 to index
    %64 = memref.load %arg4[%63] : memref<60xf32, #tpu.memory_space<smem>>
    %c5_i32_6 = arith.constant 5 : i32
    %65 = arith.addi %1, %c5_i32_6 : i32
    %66 = arith.index_cast %65 : i32 to index
    %67 = memref.load %arg4[%66] : memref<60xf32, #tpu.memory_space<smem>>
    %c6_i32_7 = arith.constant 6 : i32
    %68 = arith.addi %1, %c6_i32_7 : i32
    %69 = arith.index_cast %68 : i32 to index
    %70 = memref.load %arg4[%69] : memref<60xf32, #tpu.memory_space<smem>>
    %c7_i32_8 = arith.constant 7 : i32
    %71 = arith.addi %1, %c7_i32_8 : i32
    %72 = arith.index_cast %71 : i32 to index
    %73 = memref.load %arg4[%72] : memref<60xf32, #tpu.memory_space<smem>>
    %c8_i32_9 = arith.constant 8 : i32
    %74 = arith.addi %1, %c8_i32_9 : i32
    %75 = arith.index_cast %74 : i32 to index
    %76 = memref.load %arg4[%75] : memref<60xf32, #tpu.memory_space<smem>>
    %c9_i32_10 = arith.constant 9 : i32
    %77 = arith.addi %1, %c9_i32_10 : i32
    %78 = arith.index_cast %77 : i32 to index
    %79 = memref.load %arg4[%78] : memref<60xf32, #tpu.memory_space<smem>>
    %c10_i32_11 = arith.constant 10 : i32
    %80 = arith.addi %1, %c10_i32_11 : i32
    %81 = arith.index_cast %80 : i32 to index
    %82 = memref.load %arg4[%81] : memref<60xf32, #tpu.memory_space<smem>>
    %c11_i32_12 = arith.constant 11 : i32
    %83 = arith.addi %1, %c11_i32_12 : i32
    %84 = arith.index_cast %83 : i32 to index
    %85 = memref.load %arg4[%84] : memref<60xf32, #tpu.memory_space<smem>>
    %c12_i32_13 = arith.constant 12 : i32
    %86 = arith.addi %1, %c12_i32_13 : i32
    %87 = arith.index_cast %86 : i32 to index
    %88 = memref.load %arg4[%87] : memref<60xf32, #tpu.memory_space<smem>>
    %c13_i32_14 = arith.constant 13 : i32
    %89 = arith.addi %1, %c13_i32_14 : i32
    %90 = arith.index_cast %89 : i32 to index
    %91 = memref.load %arg4[%90] : memref<60xf32, #tpu.memory_space<smem>>
    %c14_i32_15 = arith.constant 14 : i32
    %92 = arith.addi %1, %c14_i32_15 : i32
    %93 = arith.index_cast %92 : i32 to index
    %94 = memref.load %arg4[%93] : memref<60xf32, #tpu.memory_space<smem>>
    %c0 = arith.constant 0 : index
    %c0_16 = arith.constant 0 : index
    %c0_17 = arith.constant 0 : index
    %95 = vector.load %arg2[%c0, %c0_16, %c0_17] : memref<1x16x128xf32, #tpu.memory_space<vmem>>, vector<1x16x128xf32>
    %96 = vector.shape_cast %95 : vector<1x16x128xf32> to vector<16x128xf32>
    %97 = vector.broadcast %4 : f32 to vector<16x128xf32>
    %98 = vector.broadcast %52 : f32 to vector<16x128xf32>
    %99 = arith.cmpf ogt, %96, %98 : vector<16x128xf32>
    %100 = vector.broadcast %7 : f32 to vector<16x128xf32>
    %101 = arith.select %99, %100, %97 : vector<16x128xi1>, vector<16x128xf32>
    %102 = vector.broadcast %55 : f32 to vector<16x128xf32>
    %103 = arith.cmpf ogt, %96, %102 : vector<16x128xf32>
    %104 = vector.broadcast %10 : f32 to vector<16x128xf32>
    %105 = arith.select %103, %104, %101 : vector<16x128xi1>, vector<16x128xf32>
    %106 = vector.broadcast %58 : f32 to vector<16x128xf32>
    %107 = arith.cmpf ogt, %96, %106 : vector<16x128xf32>
    %108 = vector.broadcast %13 : f32 to vector<16x128xf32>
    %109 = arith.select %107, %108, %105 : vector<16x128xi1>, vector<16x128xf32>
    %110 = vector.broadcast %61 : f32 to vector<16x128xf32>
    %111 = arith.cmpf ogt, %96, %110 : vector<16x128xf32>
    %112 = vector.broadcast %16 : f32 to vector<16x128xf32>
    %113 = arith.select %111, %112, %109 : vector<16x128xi1>, vector<16x128xf32>
    %114 = vector.broadcast %64 : f32 to vector<16x128xf32>
    %115 = arith.cmpf ogt, %96, %114 : vector<16x128xf32>
    %116 = vector.broadcast %19 : f32 to vector<16x128xf32>
    %117 = arith.select %115, %116, %113 : vector<16x128xi1>, vector<16x128xf32>
    %118 = vector.broadcast %67 : f32 to vector<16x128xf32>
    %119 = arith.cmpf ogt, %96, %118 : vector<16x128xf32>
    %120 = vector.broadcast %22 : f32 to vector<16x128xf32>
    %121 = arith.select %119, %120, %117 : vector<16x128xi1>, vector<16x128xf32>
    %122 = vector.broadcast %70 : f32 to vector<16x128xf32>
    %123 = arith.cmpf ogt, %96, %122 : vector<16x128xf32>
    %124 = vector.broadcast %25 : f32 to vector<16x128xf32>
    %125 = arith.select %123, %124, %121 : vector<16x128xi1>, vector<16x128xf32>
    %126 = vector.broadcast %73 : f32 to vector<16x128xf32>
    %127 = arith.cmpf ogt, %96, %126 : vector<16x128xf32>
    %128 = vector.broadcast %28 : f32 to vector<16x128xf32>
    %129 = arith.select %127, %128, %125 : vector<16x128xi1>, vector<16x128xf32>
    %130 = vector.broadcast %76 : f32 to vector<16x128xf32>
    %131 = arith.cmpf ogt, %96, %130 : vector<16x128xf32>
    %132 = vector.broadcast %31 : f32 to vector<16x128xf32>
    %133 = arith.select %131, %132, %129 : vector<16x128xi1>, vector<16x128xf32>
    %134 = vector.broadcast %79 : f32 to vector<16x128xf32>
    %135 = arith.cmpf ogt, %96, %134 : vector<16x128xf32>
    %136 = vector.broadcast %34 : f32 to vector<16x128xf32>
    %137 = arith.select %135, %136, %133 : vector<16x128xi1>, vector<16x128xf32>
    %138 = vector.broadcast %82 : f32 to vector<16x128xf32>
    %139 = arith.cmpf ogt, %96, %138 : vector<16x128xf32>
    %140 = vector.broadcast %37 : f32 to vector<16x128xf32>
    %141 = arith.select %139, %140, %137 : vector<16x128xi1>, vector<16x128xf32>
    %142 = vector.broadcast %85 : f32 to vector<16x128xf32>
    %143 = arith.cmpf ogt, %96, %142 : vector<16x128xf32>
    %144 = vector.broadcast %40 : f32 to vector<16x128xf32>
    %145 = arith.select %143, %144, %141 : vector<16x128xi1>, vector<16x128xf32>
    %146 = vector.broadcast %88 : f32 to vector<16x128xf32>
    %147 = arith.cmpf ogt, %96, %146 : vector<16x128xf32>
    %148 = vector.broadcast %43 : f32 to vector<16x128xf32>
    %149 = arith.select %147, %148, %145 : vector<16x128xi1>, vector<16x128xf32>
    %150 = vector.broadcast %91 : f32 to vector<16x128xf32>
    %151 = arith.cmpf ogt, %96, %150 : vector<16x128xf32>
    %152 = vector.broadcast %46 : f32 to vector<16x128xf32>
    %153 = arith.select %151, %152, %149 : vector<16x128xi1>, vector<16x128xf32>
    %154 = vector.broadcast %94 : f32 to vector<16x128xf32>
    %155 = arith.cmpf ogt, %96, %154 : vector<16x128xf32>
    %156 = vector.broadcast %49 : f32 to vector<16x128xf32>
    %157 = arith.select %155, %156, %153 : vector<16x128xi1>, vector<16x128xf32>
    %c0_18 = arith.constant 0 : index
    %c0_19 = arith.constant 0 : index
    %c0_20 = arith.constant 0 : index
    %158 = vector.load %arg5[%c0_18, %c0_19, %c0_20] : memref<1x16x128xf32, #tpu.memory_space<vmem>>, vector<1x16x128xf32>
    %159 = vector.shape_cast %158 : vector<1x16x128xf32> to vector<16x128xf32>
    %160 = vector.shape_cast %157 : vector<16x128xf32> to vector<1x16x128xf32>
    tpu.vector_store %arg5[%c0_18, %c0_19, %c0_20], %160 {strides = array<i32>} : memref<1x16x128xf32, #tpu.memory_space<vmem>>, vector<1x16x128xf32>,
    return
  }
  func.func @transform_0(%arg0: i32, %arg1: i32) -> (i32, i32, i32) {
    %c0_i32 = arith.constant 0 : i32
    %c0_i32_0 = arith.constant 0 : i32
    return %arg0, %arg1, %c0_i32 : i32, i32, i32
  }
  func.func @transform_1(%arg0: i32, %arg1: i32) -> i32 {
    %c0_i32 = arith.constant 0 : i32
    %c0_i32_0 = arith.constant 0 : i32
    return %c0_i32 : i32
  }
  func.func @transform_2(%arg0: i32, %arg1: i32) -> i32 {
    %c0_i32 = arith.constant 0 : i32
    %c0_i32_0 = arith.constant 0 : i32
    return %c0_i32 : i32
  }
  func.func @transform_3(%arg0: i32, %arg1: i32) -> (i32, i32, i32) {
    %c0_i32 = arith.constant 0 : i32
    %c0_i32_0 = arith.constant 0 : i32
    return %arg0, %arg1, %c0_i32 : i32, i32, i32
  }
}

</mosaic_0001>

<bundles_post_ra>
// kernel: tpu_custom_call.1
= control target key start
LH: loop header
LB: loop body
LE: loop exit
PB: predicated region body
PF: predicated region fallthrough
CT: control target
= control target key end

     0   :  { %s1186_s0 = inlined_call_operand.hbm [shape: f32[4,16,128], index: 0, kind: input, shape index: {}]   ;;  %s1187_s1 = inlined_call_operand.hbm [shape: f32[64], index: 1, kind: input, shape index: {}]   ;;  %s1188_s2 = inlined_call_operand.vmem [shape: f32[60], index: 2, kind: input, shape index: {}]   ;;  %s1189_s3 = inlined_call_operand.hbm [shape: f32[4,16,128], index: 3, kind: output, shape index: {}]  }
   0x1   :  { %1201 = sst [smem:[#allocation23_spill]] %s1186_s0 }
   0x2   :  { %1202 = sst [smem:[#allocation24_spill]] %s1187_s1 }
   0x3   :  { %1203 = sst [smem:[#allocation25_spill]] %s1188_s2 }
   0x4   :  { %8 = vsyncpa [#allocation3], 0 }
   0x5   :  { %10 = vsyncpa [#allocation3 + $0x1], 0 }
   0x6   :  { %11 = vsyncpa [#allocation5], 0 }
   0x7   :  { %12 = vsyncpa [#allocation6], 0 }
   0x8   :  { %13 = vsyncpa [#allocation4], 0 }
   0x9   :  { %15 = vsyncpa [#allocation4 + $0x1], 0  ;;  %s811_s12 = smov 0   ;;  %s813_s13 = smov 0  }
   0xa   :  { %s815_s14 = smov 0   ;;  %s817_s15 = smov 0  }
   0xb   :  { %s819_s16 = smov 0   ;;  %s821_s17 = smov 0  }
   0xc LB: > { %1204 = sst [smem:[#allocation14_spill]] %s763_s12  ;;  %s524_s18 = sadd.s32 4294967295, %s783_s17   ;;  %s783_s17 = sphi %s821_s17, %s21_s17   ;;  %s779_s16 = sphi %s819_s16, %s1232_s16   ;;  %s775_s15 = sphi %s817_s15, %s1231_s15   ;;  %s771_s14 = sphi %s815_s14, %s1230_s14   ;;  %s767_s13 = sphi %s813_s13, %s1229_s13   ;;  %s763_s12 = sphi %s811_s12, %s1228_s12  }
   0xd   : > { %1205 = sst [smem:[#allocation15_spill]] %s767_s13  ;;  %s525_s19 = sadd.s32 4294967294, %s783_s17  }
   0xe   : > { %1206 = sst [smem:[#allocation16_spill]] %s771_s14  ;;  %s42_s20 = sadd.s32 1, %s771_s14 }
   0xf   : > { %1207 = sst [smem:[#allocation17_spill]] %s779_s16  ;;  %p49_p0 = scmp.ne.s32.totalorder %s771_s14, %s767_s13 }
  0x10   : > { %1208 = sst [smem:[#allocation18_spill]] %s783_s17  ;;  %p50_p1 = scmp.eq.s32.totalorder %s783_s17, 0 }
  0x11   : > { %p55_p2 = scmp.ne.s32.totalorder %s767_s13, %s763_s12  ;;  %p849_p3 = scmp.eq.s32.totalorder %s524_s18, 0 }
  0x12   : > { %p123_p4 = scmp.eq.s32.totalorder %s524_s18, 3  ;;  %p853_p5 = por %p50_p1, %p49_p0 }
  0x13   : > { %p129_p6 = scmp.eq.s32.totalorder %s525_s19, 3  ;;  %p859_p7 = por %p849_p3, %p55_p2 }
  0x14   : > { %p863_p8 = por %p123_p4, %p49_p0  ;;  %p526_p10 = scmp.ge.s32.totalorder %s783_s17, 1 }
  0x15   : > { %p867_p9 = por %p129_p6, %p55_p2  ;;  %p136_p11 = scmp.lt.s32.totalorder %s783_s17, 5 }
  0x16   : > { %s1212_s24 = scalar_select %p863_p8, 1, 0 }
  0x17   : > { %s1214_s25 = scalar_select %p867_p9, 1, 0 }
  0x18   : > { %1213 = sst [smem:[#allocation19_spill]] %s1212_s24  ;;  %p876_p12 = pnand %p526_p10, %p136_p11 }
  0x19   : > { %1215 = sst [smem:[#allocation20_spill]] %s1214_s25  ;;  %p575_p13 = scmp.lt.s32.totalorder %s783_s17, 4 }
  0x1a   : > { %s1216_s1 = sld [smem:[#allocation24_spill]]  ;;  %p558_p0 = pneg %p876_p12 }
  0x1b   : > { %s1218_s2 = sld [smem:[#allocation25_spill]]  ;;  %p888_p1 = pnand %p575_p13, %p853_p5 }
  0x1c   : > { %p559_p2 = pnand %p558_p0, %p849_p3  ;;  %s785_s7 = smov [#allocation7]  }
  0x1d   : > { %s786_s8 = smov [#allocation8]   ;;  %s33_s9 = sadd.s32 1, %s779_s16 }
  0x1e   : > { %s169_s10 = sand.u32 1, %s771_s14   ;;  %p35_p4 = scmp.ge.s32.totalorder %s33_s9, 4 }
  0x1f   : > { %s530_s11 = sshll.u32 %s169_s10, 4  ;;  %s544_s18 = sshll.u32 %s779_s16, 4 }
  0x20   : > { %s148_s28 = sshll.u32 %s1216_s1, 4  ;;  %s1234_s9 = smov (%p35_p4, %s33_s9), 0  ;;  %s149_s28 = int_to_ptr.hbm [resolvable:$true] %s148_s28 }
  0x21   : > { %s158_s5 = sshll.u32 %s1218_s2, 4  ;;  %1220 = sst [smem:[#allocation21_spill]] %s1234_s9  ;;  %s159_s5 = int_to_ptr.vmem [resolvable:$true] %s158_s5 }
  0x22   : > { %561 = dma.hbm_to_smem (!%p559_p2), %s149_s28, 16, %s785_s7, [#allocation5]  }
  0x23   : > { %564 = dma.vmem_to_smem (!%p559_p2), %s159_s5, 16, %s786_s8, [#allocation6]  }
  0x24   : > { %s1221_s0 = sld [smem:[#allocation23_spill]]  ;;  %s37_s27 = ssub.s32 %s779_s16, %s1234_s9 }
  0x25   : > { %p40_p5 = scmp.eq.s32.totalorder %s37_s27, 0  ;;  %s173_s28 = scalar_lea.vmem [#allocation2], %s530_s11 }
  0x26   : > { %s183_s4 = sshll.u32 %s173_s28, 4  ;;  %s170_s7 = scalar_lea.sflag [#allocation3], %s169_s10  ;;  %s184_s4 = int_to_ptr.vmem [resolvable:$true] %s183_s4 }
  0x27   : > { %s907_s5 = scalar_select %p40_p5, %s771_s14, %s42_s20  }
  0x28   : > { %s787_s8 = smov 128   ;;  %s788_s1 = smov 8  }
  0x29   : > { %1222 = sst [smem:[#allocation22_spill]] %s907_s5  ;;  %195 = sbr.rel (%p876_p12) target bundleno = 104 (0x68), region = 32 }
  0x2a   : > { %s180_s26 = scalar_lea.hbm %s1221_s0, %s544_s18  ;;  %s914_s18 = sand.u32 (!%p876_p12), 1, %s767_s13  }
  0x2b   : > { %s181_s30 = sshll.u32 %s180_s26, 4  ;;  %s1190_s11 = sshll.u32 (!%p876_p12), %s914_s18, 4  ;;  %s182_s30 = int_to_ptr.hbm [resolvable:$true] %s181_s30 }
  0x2c   : > { %568 = dma.hbm_to_vmem [thread:$0]  (!%p888_p1), %s182_s30, 256, %s184_s4, %s170_s7, %s787_s8, %s787_s8, %s788_s1  }
  0x2d   : > { %s198_s19 = scalar_lea.sflag (!%p876_p12), [#allocation3], %s914_s18  ;;  %s920_s20 = scalar_lea.vmem (!%p876_p12), [#allocation2], %s1190_s11 }
  0x2e   : > { %746 = dma.done.wait (%p859_p7), %s198_s19, 256  }
  0x2f   : > { %748 = vsyncadd (%p859_p7), %s198_s19, 4294967040 }
  0x30   : > { %750 = dma.done.wait (%p849_p3), [#allocation5], 16  }
  0x31   : > { %752 = vsyncadd (%p849_p3), [#allocation5], 4294967280 }
  0x32   : > { %754 = dma.done.wait (%p849_p3), [#allocation6], 16  }
  0x33   : > { %756 = vsyncadd (%p849_p3), [#allocation6], 4294967280 }
  0x34   : > { %217 = sfence }
  0x35   : > { %s935_s1 = sshll.u32 %s775_s15, 4  ;;  %s938_s23 = smul.u32 15, %s775_s15  ;;  %v1001_v0 = vld [vmem:[%s920_s20] sm:$0xff]  ;;  %v1004_v1 = vld [vmem:[%s920_s20 + $0x8] sm:$0xff] }
  0x36   : > { %s941_s29 = sld [smem:[#allocation7 + %s935_s1]]  ;;  %s241_s21 = sadd.s32 1, %s935_s1 }
  0x37   : > { %s243_s6 = sadd.s32 2, %s935_s1  ;;  %s945_s10 = sld [smem:[#allocation7 + %s241_s21]] }
  0x38   : > { %s245_s22 = sadd.s32 3, %s935_s1  ;;  %s948_s26 = sld [smem:[#allocation7 + %s243_s6]] }
  0x39   : > { %s247_s27 = sadd.s32 4, %s935_s1  ;;  %s951_s30 = sld [smem:[#allocation7 + %s245_s22]] }
  0x3a   : > { %s249_s28 = sadd.s32 5, %s935_s1  ;;  %s954_s15 = sld [smem:[#allocation7 + %s247_s27]] }
  0x3b   : > { %s251_s4 = sadd.s32 6, %s935_s1  ;;  %s957_s7 = sld [smem:[#allocation7 + %s249_s28]] }
  0x3c   : > { %s253_s8 = sadd.s32 7, %s935_s1  ;;  %s960_s19 = sld [smem:[#allocation7 + %s251_s4]]  ;;  %v302_v2 = vstv %s941_s29 }
  0x3d   : > { %s255_s21 = sadd.s32 8, %s935_s1  ;;  %s963_s6 = sld [smem:[#allocation7 + %s253_s8]]  ;;  %v306_v3 = vstv %s945_s10 }
  0x3e   : > { %s257_s11 = sadd.s32 9, %s935_s1  ;;  %s966_s22 = sld [smem:[#allocation7 + %s255_s21]]  ;;  %v312_v4 = vstv %s948_s26 }
  0x3f   : > { %s259_s0 = sadd.s32 10, %s935_s1  ;;  %s969_s27 = sld [smem:[#allocation7 + %s257_s11]]  ;;  %v318_v5 = vstv %s951_s30 }
  0x40   : > { %s261_s2 = sadd.s32 11, %s935_s1  ;;  %s972_s28 = sld [smem:[#allocation7 + %s259_s0]]  ;;  %v324_v6 = vstv %s954_s15 }
  0x41   : > { %s263_s9 = sadd.s32 12, %s935_s1  ;;  %s975_s4 = sld [smem:[#allocation7 + %s261_s2]]  ;;  %v330_v7 = vstv %s957_s7 }
  0x42   : > { %s265_s8 = sadd.s32 13, %s935_s1  ;;  %s978_s16 = sld [smem:[#allocation7 + %s263_s9]]  ;;  %v336_v8 = vstv %s960_s19 }
  0x43   : > { %s267_s21 = sadd.s32 14, %s935_s1  ;;  %s981_s5 = sld [smem:[#allocation7 + %s265_s8]]  ;;  %v342_v9 = vstv %s963_s6 }
  0x44   : > { %s269_s11 = sadd.s32 15, %s935_s1  ;;  %s984_s14 = sld [smem:[#allocation7 + %s267_s21]]  ;;  %v348_v10 = vstv %s966_s22 }
  0x45   : > { %s272_s0 = sadd.s32 1, %s938_s23  ;;  %s987_s13 = sld [smem:[#allocation7 + %s269_s11]]  ;;  %v354_v11 = vstv %s969_s27 }
  0x46   : > { %s274_s2 = sadd.s32 2, %s938_s23  ;;  %s991_s25 = sld [smem:[#allocation8 + %s938_s23]]  ;;  %v360_v12 = vstv %s972_s28 }
  0x47   : > { %s276_s9 = sadd.s32 3, %s938_s23  ;;  %s994_s12 = sld [smem:[#allocation8 + %s272_s0]]  ;;  %v366_v13 = vstv %s975_s4 }
  0x48   : > { %s278_s8 = sadd.s32 4, %s938_s23  ;;  %s997_s17 = sld [smem:[#allocation8 + %s274_s2]]  ;;  %v372_v15 = vstv %s978_s16 }
  0x49   : > { %s280_s21 = sadd.s32 5, %s938_s23  ;;  %s1006_s11 = sld [smem:[#allocation8 + %s276_s9]]  ;;  %v378_v16 = vstv %s981_s5 }
  0x4a   : > { %s282_s24 = sadd.s32 6, %s938_s23  ;;  %s1013_s0 = sld [smem:[#allocation8 + %s278_s8]]  ;;  %v384_v17 = vstv %s984_s14 }
  0x4b   : > { %s284_s2 = sadd.s32 7, %s938_s23  ;;  %s1020_s20 = sld [smem:[#allocation8 + %s280_s21]]  ;;  %v390_v19 = vstv %s987_s13 }
  0x4c   : > { %s286_s29 = sadd.s32 8, %s938_s23  ;;  %s1027_s10 = sld [smem:[#allocation8 + %s282_s24]]  ;;  %v303_v14 = vstv %s991_s25 }
  0x4d   : > { %s288_s26 = sadd.s32 9, %s938_s23  ;;  %s1034_s30 = sld [smem:[#allocation8 + %s284_s2]]  ;;  %vm304_vm0 = vcmp.gt.f32.partialorder %v1001_v0, %v303_v14  ;;  %v309_v18 = vstv %s994_s12  ;;  %vm305_vm1 = vcmp.gt.f32.partialorder %v1004_v1, %v303_v14 }
  0x4e   : > { %s290_s15 = sadd.s32 10, %s938_s23  ;;  %s1041_s24 = sld [smem:[#allocation8 + %s286_s29]]  ;;  %v307_v20 = vsel %vm304_vm0, %v306_v3, %v302_v2  ;;  %vm310_vm2 = vcmp.gt.f32.partialorder %v1001_v0, %v309_v18  ;;  %v315_v21 = vstv %s997_s17  ;;  %v308_v22 = vsel %vm305_vm1, %v306_v3, %v302_v2 }
  0x4f   : > { %s292_s9 = sadd.s32 11, %s938_s23  ;;  %s1046_s25 = sld [smem:[#allocation8 + %s288_s26]]  ;;  %v313_v23 = vsel %vm310_vm2, %v312_v4, %v307_v20  ;;  %vm316_vm3 = vcmp.gt.f32.partialorder %v1001_v0, %v315_v21  ;;  %v321_v24 = vstv %s1006_s11  ;;  %vm311_vm4 = vcmp.gt.f32.partialorder %v1004_v1, %v309_v18 }
  0x50   : > { %s294_s8 = sadd.s32 12, %s938_s23  ;;  %s1052_s12 = sld [smem:[#allocation8 + %s290_s15]]  ;;  %v319_v25 = vsel %vm316_vm3, %v318_v5, %v313_v23  ;;  %vm322_vm5 = vcmp.gt.f32.partialorder %v1001_v0, %v321_v24  ;;  %v327_v26 = vstv %s1013_s0  ;;  %v314_v27 = vsel %vm311_vm4, %v312_v4, %v308_v22 }
  0x51   : > { %s296_s21 = sadd.s32 13, %s938_s23  ;;  %s1057_s17 = sld [smem:[#allocation8 + %s292_s9]]  ;;  %v325_v28 = vsel %vm322_vm5, %v324_v6, %v319_v25  ;;  %vm328_vm6 = vcmp.gt.f32.partialorder %v1001_v0, %v327_v26  ;;  %v333_v29 = vstv %s1020_s20  ;;  %vm317_vm7 = vcmp.gt.f32.partialorder %v1004_v1, %v315_v21 }
  0x52   : > { %s298_s2 = sadd.s32 14, %s938_s23  ;;  %s1063_s11 = sld [smem:[#allocation8 + %s294_s8]]  ;;  %v331_v30 = vsel %vm328_vm6, %v330_v7, %v325_v28  ;;  %vm334_vm8 = vcmp.gt.f32.partialorder %v1001_v0, %v333_v29  ;;  %v339_v31 = vstv %s1027_s10  ;;  %v320_v32 = vsel %vm317_vm7, %v318_v5, %v314_v27 }
  0x53   : > { %s1069_s23 = sld [smem:[#allocation8 + %s296_s21]]  ;;  %v337_v33 = vsel %vm334_vm8, %v336_v8, %v331_v30  ;;  %vm340_vm9 = vcmp.gt.f32.partialorder %v1001_v0, %v339_v31  ;;  %v345_v34 = vstv %s1034_s30  ;;  %vm323_vm10 = vcmp.gt.f32.partialorder %v1004_v1, %v321_v24  ;;  %s409_s6 = scalar_lea.hbm %s1189_s3, %s935_s1 }
  0x54   : > { %s1076_s0 = sld [smem:[#allocation8 + %s298_s2]]  ;;  %v343_v35 = vsel %vm340_vm9, %v342_v9, %v337_v33  ;;  %vm346_vm11 = vcmp.gt.f32.partialorder %v1001_v0, %v345_v34  ;;  %v351_v36 = vstv %s1041_s24  ;;  %v326_v37 = vsel %vm323_vm10, %v324_v6, %v320_v32  ;;  %s1223_s20 = sshll.u32 %s914_s18, 4 }
  0x55   : > { %v349_v38 = vsel %vm346_vm11, %v348_v10, %v343_v35  ;;  %vm352_vm12 = vcmp.gt.f32.partialorder %v1001_v0, %v351_v36  ;;  %v357_v39 = vstv %s1046_s25  ;;  %vm329_vm13 = vcmp.gt.f32.partialorder %v1004_v1, %v327_v26  ;;  %s235_s29 = scalar_lea.vmem [#allocation9], %s1223_s20  ;;  %s1141_s1 = sshll.u32 %s409_s6, 4  ;;  %s413_s1 = int_to_ptr.hbm [resolvable:$true] %s1141_s1 }
  0x56   : > { %v355_v40 = vsel %vm352_vm12, %v354_v11, %v349_v38  ;;  %vm358_vm14 = vcmp.gt.f32.partialorder %v1001_v0, %v357_v39  ;;  %v363_v41 = vstv %s1052_s12  ;;  %v332_v42 = vsel %vm329_vm13, %v330_v7, %v326_v37  ;;  %s410_s10 = sshll.u32 %s235_s29, 4  ;;  %s396_s27 = scalar_lea.sflag [#allocation4], %s914_s18  ;;  %s411_s10 = int_to_ptr.vmem [resolvable:$true] %s410_s10 }
  0x57   : > { %v361_v43 = vsel %vm358_vm14, %v360_v12, %v355_v40  ;;  %vm364_vm15 = vcmp.gt.f32.partialorder %v1001_v0, %v363_v41  ;;  %v369_v44 = vstv %s1057_s17  ;;  %vm335_vm0 = vcmp.gt.f32.partialorder %v1004_v1, %v333_v29  ;;  %s707_s28 = sshra.s32 %s413_s1, 4  ;;  %s713_s30 = scalar_lea.hbm %s1189_s3, 64  ;;  %s708_s28 = int_to_ptr.hbm [resolvable:$true] %s707_s28 }
  0x58   : > { %v367_v45 = vsel %vm364_vm15, %v366_v13, %v361_v43  ;;  %vm370_vm1 = vcmp.gt.f32.partialorder %v1001_v0, %v369_v44  ;;  %v375_v46 = vstv %s1063_s11  ;;  %v338_v47 = vsel %vm335_vm0, %v336_v8, %v332_v42  ;;  %s709_s4 = scalar_lea.hbm %s708_s28, 16  ;;  %p714_p10 = scmp.lt.s32.totalorder %s708_s28, %s1189_s3 }
  0x59   : > { %v373_v48 = vsel %vm370_vm1, %v372_v15, %v367_v45  ;;  %vm376_vm2 = vcmp.gt.f32.partialorder %v1001_v0, %v375_v46  ;;  %v381_v49 = vstv %s1069_s23  ;;  %vm341_vm3 = vcmp.gt.f32.partialorder %v1004_v1, %v339_v31  ;;  %p710_p3 = scmp.ne.s32.totalorder %s708_s28, %s709_s4  ;;  %p715_p11 = scmp.lt.s32.totalorder %s713_s30, %s709_s4 }
  0x5a   : > { %v379_v50 = vsel %vm376_vm2, %v378_v16, %v373_v48  ;;  %vm382_vm4 = vcmp.gt.f32.partialorder %v1001_v0, %v381_v49  ;;  %v387_v51 = vstv %s1076_s0  ;;  %v344_v52 = vsel %vm341_vm3, %v342_v9, %v338_v47 }
  0x5b   : > { %v385_v53 = vsel %vm382_vm4, %v384_v17, %v379_v50  ;;  %vm388_vm5 = vcmp.gt.f32.partialorder %v1001_v0, %v387_v51  ;;  %vm347_vm6 = vcmp.gt.f32.partialorder %v1004_v1, %v345_v34  ;;  %vm353_vm7 = vcmp.gt.f32.partialorder %v1004_v1, %v351_v36  ;;  %p711_p6 = pnand %p710_p3, %p863_p8  ;;  %p716_p12 = por %p715_p11, %p714_p10 }
  0x5c   : > { %v391_v54 = vsel %vm388_vm5, %v390_v19, %v385_v53  ;;  %v350_v55 = vsel %vm347_vm6, %v348_v10, %v344_v52  ;;  %vm359_vm8 = vcmp.gt.f32.partialorder %v1004_v1, %v357_v39  ;;  %vm365_vm9 = vcmp.gt.f32.partialorder %v1004_v1, %v363_v41 }
  0x5d   : > { %393 = vst [vmem:[%s235_s29] sm:$0xff] %v391_v54  ;;  %v356_v56 = vsel %vm353_vm7, %v354_v11, %v350_v55  ;;  %vm371_vm10 = vcmp.gt.f32.partialorder %v1004_v1, %v369_v44  ;;  %vm377_vm11 = vcmp.gt.f32.partialorder %v1004_v1, %v375_v46  ;;  %vm383_vm12 = vcmp.gt.f32.partialorder %v1004_v1, %v381_v49  ;;  %p712_p7 = pneg %p711_p6 }
  0x5e   : > { %v362_v57 = vsel %vm359_vm8, %v360_v12, %v356_v56  ;;  %vm389_vm13 = vcmp.gt.f32.partialorder %v1004_v1, %v387_v51 }
  0x5f   : > { %v368_v58 = vsel %vm365_vm9, %v366_v13, %v362_v57  ;;  %p717_p13 = pnand %p716_p12, %p712_p7 }
  0x60   : > { %v374_v59 = vsel %vm371_vm10, %v372_v15, %v368_v58 }
  0x61   : > { %v380_v60 = vsel %vm377_vm11, %v378_v16, %v374_v59 }
  0x62   : > { %v386_v61 = vsel %vm383_vm12, %v384_v17, %v380_v60 }
  0x63   : > { %v392_v62 = vsel %vm389_vm13, %v390_v19, %v386_v61 }
  0x64   : > { %394 = vst [vmem:[%s235_s29 + $0x8] sm:$0xff] %v392_v62 }
  0x65   : > { %720 = shalt.err (!%p717_p13)
}
  0x66   : > { %s789_s13 = smov 128   ;;  %s790_s14 = smov 8  }
  0x67   : > { %556 = dma.vmem_to_hbm [thread:$0]  (%p863_p8), %s411_s10, 256, %s413_s1, %s396_s27, %s789_s13, %s789_s13, %s790_s14  }
  0x68 PF: > { %s1225_s18 = sld [smem:[#allocation18_spill]] }
  0x69   : > { %s1226_s24 = sld [smem:[#allocation14_spill]] }
  0x6e   : > { %p578_p0 = scmp.ge.s32.totalorder %s1225_s18, 2 }
  0x6f   : > { %s427_s25 = sand.u32 1, %s1226_s24  }
  0x70   : > { %p570_p1 = pnand %p578_p0, %p867_p9  ;;  %s428_s8 = scalar_lea.sflag [#allocation4], %s427_s25 }
  0x72   : > { %p571_p2 = pneg %p570_p1 }
  0x74   : > { %758 = dma.done.wait (%p571_p2), %s428_s8, 256  }
  0x75   : > { %760 = vsyncadd (%p571_p2), %s428_s8, 4294967040  ;;  %s21_s17 = sadd.s32 1, %s1225_s18   ;;  %s1228_s12 = sld [smem:[#allocation15_spill]] }
  0x76   : > { %p18_p4 = scmp.ge.s32.totalorder %s21_s17, 6   ;;  %s1229_s13 = sld [smem:[#allocation16_spill]] }
  0x77   : > { %s1230_s14 = sld [smem:[#allocation22_spill]] }
  0x78   : > { %s1231_s15 = sld [smem:[#allocation17_spill]]  ;;  %20 = sbr.rel (!%p18_p4) target bundleno = 12 (0xc), region = 87 }
  0x79   : > { %s1232_s16 = sld [smem:[#allocation21_spill]] }
  0x7d   :  { %434 = vsyncpa [#allocation3], 1 }
  0x7e   :  { %436 = vsyncpa [#allocation3 + $0x1], 1 }
  0x7f   :  { %437 = vsyncpa [#allocation4], 1 }
  0x80   :  { %439 = vsyncpa [#allocation4 + $0x1], 1 }
  0x81   :  { %440 = vsyncpa [#allocation5], 1 }
  0x82   :  { %442 = vsyncpa [#allocation5 + $0x1], 1 }
  0x83   :  { %443 = vsyncpa [#allocation6], 1 }
  0x84   :  { %445 = vsyncpa [#allocation6 + $0x1], 1 }

</bundles_post_ra>
